<compile_context>
chip_gen: v6e
topology: v6e:2x2x1
jax: 0.10.0
libtpu: 0.0.40
codegen_flags: <defaults>
</compile_context>

<pallas_src>
import math

import jax
import jax.numpy as jnp
from jax import lax
from jax.experimental import pallas as pl
from jax.experimental.pallas import tpu as pltpu


# ---------------------------------------------------------------------------
# helpers
# ---------------------------------------------------------------------------
def _round_up(x, m):
    return (x + m - 1) // m * m


def _pick_tile(dim, target):
    # Full-dim block when the dim already fits (no padding); else tile.
    return dim if dim <= target else target


def _gelu_exact(x):
    # matches torch.nn.GELU() default (erf-based)
    inv_sqrt2 = jnp.float32(0.7071067811865476)
    return 0.5 * x * (1.0 + lax.erf(x * inv_sqrt2))


def _default_vmem_limit():
    """Per-generation scoped-VMEM limit with headroom (review: don't pin 64MiB on v7x)."""
    try:
        cap = int(pltpu.get_tpu_info().vmem_capacity_bytes)
    except Exception:
        cap = 64 * 1024 * 1024          # conservative fallback (v7x per-core)
    return int(max(32 * 1024 * 1024,
                   min(cap - 16 * 1024 * 1024, 100 * 1024 * 1024)))


_VMEM_LIMIT = _default_vmem_limit()


# ---------------------------------------------------------------------------
# Tiled linear (+ optional fused GELU):  out = act(x @ W + b)
#   x, W are bf16 (cast in the wrapper -> bf16 DMA streams), f32 accumulation.
# ---------------------------------------------------------------------------
def _make_linear_kernel(activation):
    def kernel(x_ref, w_ref, b_ref, o_ref, acc_ref):
        k = pl.program_id(2)

        @pl.when(k == 0)
        def _():
            acc_ref[...] = jnp.zeros_like(acc_ref)

        # bf16 operands straight from the DMA'd blocks; f32 accumulation.
        acc_ref[...] += jnp.dot(x_ref[...], w_ref[...],
                                preferred_element_type=jnp.float32)

        @pl.when(k == pl.num_programs(2) - 1)
        def _():
            y = acc_ref[...] + b_ref[...]
            if activation == "gelu":
                y = _gelu_exact(y)
            o_ref[...] = y.astype(o_ref.dtype)

    return kernel


def pallas_linear(x, w, b, activation=None, out_dtype=jnp.float32,
                  *, tm=512, tn=512, tk=256):
    """x: [M, K], w: [K, N], b: [N] f32 -> [M, N] (out_dtype)."""
    x = x.astype(jnp.bfloat16)
    w = w.astype(jnp.bfloat16)
    M, K = x.shape
    N = w.shape[1]
    tm, tn, tk = _pick_tile(M, tm), _pick_tile(N, tn), _pick_tile(K, tk)
    Mp, Np, Kp = _round_up(M, tm), _round_up(N, tn), _round_up(K, tk)
    if (Mp, Kp) != (M, K):
        x = jnp.pad(x, ((0, Mp - M), (0, Kp - K)))
    if (Kp, Np) != (K, N):
        w = jnp.pad(w, ((0, Kp - K), (0, Np - N)))
    if Np != N:
        b = jnp.pad(b, (0, Np - N))

    out = pl.pallas_call(
        _make_linear_kernel(activation),
        grid=(Mp // tm, Np // tn, Kp // tk),            # M, N outer; K innermost
        in_specs=[
            pl.BlockSpec((tm, tk), lambda i, j, k: (i, k)),
            pl.BlockSpec((tk, tn), lambda i, j, k: (k, j)),
            pl.BlockSpec((1, tn), lambda i, j, k: (0, j)),
        ],
        out_specs=pl.BlockSpec((tm, tn), lambda i, j, k: (i, j)),
        out_shape=jax.ShapeDtypeStruct((Mp, Np), out_dtype),
        scratch_shapes=[pltpu.VMEM((tm, tn), jnp.float32)],
        compiler_params=pltpu.CompilerParams(
            dimension_semantics=("parallel", "parallel", "arbitrary"),
            vmem_limit_bytes=_VMEM_LIMIT),
    )(x, w, b.reshape(1, Np))
    if (Mp, Np) != (M, N):
        out = out[:M, :N]
    return out


# ---------------------------------------------------------------------------
# Tiled linear fused with bias + residual-add + LayerNorm.
#   Accumulates directly into the resident f32 output block (no acc scratch).
# ---------------------------------------------------------------------------
def _linear_res_ln_kernel(x_ref, w_ref, b_ref, res_ref, g_ref, bt_ref, o_ref):
    k = pl.program_id(1)

    @pl.when(k == 0)
    def _():
        o_ref[...] = jnp.zeros_like(o_ref)

    o_ref[...] += jnp.dot(x_ref[...], w_ref[...],
                          preferred_element_type=jnp.float32)

    @pl.when(k == pl.num_programs(1) - 1)
    def _():
        y = o_ref[...] + b_ref[...] + res_ref[...]
        mu = jnp.mean(y, axis=-1, keepdims=True)
        var = jnp.mean(jnp.square(y - mu), axis=-1, keepdims=True)
        o_ref[...] = ((y - mu) * lax.rsqrt(var + 1e-12) * g_ref[...]
                      + bt_ref[...]).astype(o_ref.dtype)


def pallas_linear_res_ln(x, w, b, residual, gamma, beta, *, tm=512, tk=256):
    """LayerNorm(residual + x @ W + b), fused; N (= hidden) is one full block."""
    x = x.astype(jnp.bfloat16)
    w = w.astype(jnp.bfloat16)
    M, K = x.shape
    N = w.shape[1]
    tm, tk = _pick_tile(M, tm), _pick_tile(K, tk)
    Mp, Kp = _round_up(M, tm), _round_up(K, tk)
    if (Mp, Kp) != (M, K):
        x = jnp.pad(x, ((0, Mp - M), (0, Kp - K)))
    if Kp != K:
        w = jnp.pad(w, ((0, Kp - K), (0, 0)))
    if Mp != M:
        residual = jnp.pad(residual, ((0, Mp - M), (0, 0)))

    out = pl.pallas_call(
        _linear_res_ln_kernel,
        grid=(Mp // tm, Kp // tk),
        in_specs=[
            pl.BlockSpec((tm, tk), lambda i, k: (i, k)),
            pl.BlockSpec((tk, N), lambda i, k: (k, 0)),
            pl.BlockSpec((1, N), lambda i, k: (0, 0)),
            pl.BlockSpec((tm, N), lambda i, k: (i, 0)),
            pl.BlockSpec((1, N), lambda i, k: (0, 0)),
            pl.BlockSpec((1, N), lambda i, k: (0, 0)),
        ],
        out_specs=pl.BlockSpec((tm, N), lambda i, k: (i, 0)),
        out_shape=jax.ShapeDtypeStruct((Mp, N), jnp.float32),
        compiler_params=pltpu.CompilerParams(
            dimension_semantics=("parallel", "arbitrary"),
            vmem_limit_bytes=_VMEM_LIMIT),
    )(x, w, b.reshape(1, N), residual, gamma.reshape(1, N), beta.reshape(1, N))
    if Mp != M:
        out = out[:M]
    return out


# ---------------------------------------------------------------------------
# Fused multi-head attention, transpose-free:
#   reads the (S, 3H) bf16 qkv slab per batch row, loops heads in VMEM
#   (scores never touch HBM), writes the (S, H) bf16 context slab directly.
# ---------------------------------------------------------------------------
def _make_attn_kernel(n_heads, head_dim, scale):
    H = n_heads * head_dim

    def kernel(qkv_ref, bias_ref, o_ref):
        qkv = qkv_ref[...][0]          # (S, 3H) bf16
        bias = bias_ref[...][0]        # (1, S)  f32, 0 real / -1e9 pad

        heads = []
        # TODO(synk): for very long sequences, tile the kv axis with an online
        # softmax; BERT-scale S (<=512) fits the full row in VMEM.
        for h in range(n_heads):
            q = qkv[:, h * head_dim:(h + 1) * head_dim]
            k = qkv[:, H + h * head_dim:H + (h + 1) * head_dim]
            v = qkv[:, 2 * H + h * head_dim:2 * H + (h + 1) * head_dim]

            s = lax.dot_general(q, k, (((1,), (1,)), ((), ())),
                                preferred_element_type=jnp.float32)
            s = s * scale + bias                              # (S, S) f32
            m = jnp.max(s, axis=-1, keepdims=True)
            p = jnp.exp(s - m)
            l = jnp.sum(p, axis=-1, keepdims=True)
            ctx = jnp.dot(p.astype(qkv.dtype), v,
                          preferred_element_type=jnp.float32)
            heads.append(ctx * pl.reciprocal(l, approx=True))

        o_ref[...] = jnp.concatenate(heads, axis=-1)[None].astype(o_ref.dtype)

    return kernel


def pallas_attention(qkv, mask_bias, n_heads, head_dim, scale):
    """qkv: [B, S, 3H] bf16, mask_bias: [B, 1, S] f32 -> context [B, S, H] bf16."""
    B, S, threeH = qkv.shape
    H = n_heads * head_dim
    # TODO(synk): at B=1 serving on v7x, add a second parallel grid axis (head
    # groups) so both TensorCores get work.
    return pl.pallas_call(
        _make_attn_kernel(n_heads, head_dim, scale),
        grid=(B,),
        in_specs=[
            pl.BlockSpec((1, S, threeH), lambda b: (b, 0, 0)),
            pl.BlockSpec((1, 1, S), lambda b: (b, 0, 0)),
        ],
        out_specs=pl.BlockSpec((1, S, H), lambda b: (b, 0, 0)),
        out_shape=jax.ShapeDtypeStruct((B, S, H), jnp.bfloat16),
        compiler_params=pltpu.CompilerParams(
            dimension_semantics=("parallel",),
            vmem_limit_bytes=_VMEM_LIMIT),
    )(qkv.astype(jnp.bfloat16), mask_bias)


# ---------------------------------------------------------------------------
# Fused classifier head: S-tiled masked mean-pool accumulator -> L2 normalize
# -> MLP, lane-dense logits slab.  token_emb streamed bf16.
# ---------------------------------------------------------------------------
def _make_head_kernel(n_layers):
    def kernel(emb_ref, mask_ref, *refs):
        wb = refs[:2 * n_layers]
        o_ref = refs[2 * n_layers]
        acc_ref = refs[2 * n_layers + 1]
        cnt_ref = refs[2 * n_layers + 2]
        s = pl.program_id(1)

        @pl.when(s == 0)
        def _():
            acc_ref[...] = jnp.zeros_like(acc_ref)
            cnt_ref[...] = jnp.zeros_like(cnt_ref)

        emb = emb_ref[...].astype(jnp.float32)     # (tb, ts, H)
        mask = mask_ref[...]                       # (tb, ts, 1) f32
        # VPU multiply + sublane reduction (no degenerate M=1 matmul).
        acc_ref[...] += jnp.sum(emb * mask, axis=1)
        cnt_ref[...] += jnp.sum(mask[:, :, 0], axis=1, keepdims=True)

        @pl.when(s == pl.num_programs(1) - 1)
        def _():
            # masked mean pooling (1e-9 clamp) — exact reciprocal for parity
            pooled = acc_ref[...] / jnp.maximum(cnt_ref[...], 1e-9)
            # F.normalize(p=2, dim=1): x / max(||x||_2, 1e-12)
            norm = jnp.sqrt(jnp.sum(pooled * pooled, axis=1, keepdims=True))
            x = pooled / jnp.maximum(norm, 1e-12)
            # Linear -> GELU -> Dropout(identity, eval) -> ... -> Linear
            for i in range(n_layers):
                w = wb[2 * i][...]
                b = wb[2 * i + 1][...]
                x = jnp.dot(x, w, preferred_element_type=jnp.float32) + b
                if i < n_layers - 1:
                    x = _gelu_exact(x)
            o_ref[...] = x.astype(o_ref.dtype)

    return kernel


def classifier_head(token_emb, attention_mask, weights, biases, num_classes,
                    *, tb=8, ts=128):
    B, S, H = token_emb.shape
    n_layers = len(weights)
    ncp = _round_up(num_classes, 128)              # lane-dense logits slab
    tb, ts = _pick_tile(B, tb), _pick_tile(S, ts)
    Bp, Sp = _round_up(B, tb), _round_up(S, ts)

    emb = token_emb.astype(jnp.bfloat16)
    mask3 = attention_mask.astype(jnp.float32).reshape(B, S, 1)
    if (Bp, Sp) != (B, S):
        emb = jnp.pad(emb, ((0, Bp - B), (0, Sp - S), (0, 0)))
        mask3 = jnp.pad(mask3, ((0, Bp - B), (0, Sp - S), (0, 0)))

    args = [emb, mask3]
    in_specs = [
        pl.BlockSpec((tb, ts, H), lambda b, s: (b, s, 0)),
        pl.BlockSpec((tb, ts, 1), lambda b, s: (b, s, 0)),
    ]
    for i, (w, bb) in enumerate(zip(weights, biases)):
        if i == n_layers - 1 and w.shape[1] != ncp:   # pad final layer lanes
            w = jnp.pad(w, ((0, 0), (0, ncp - w.shape[1])))
            bb = jnp.pad(bb, (0, ncp - bb.shape[0]))
        args += [w, bb.reshape(1, -1)]
        in_specs += [pl.BlockSpec(w.shape, lambda b, s: (0, 0)),
                     pl.BlockSpec((1, bb.shape[0]), lambda b, s: (0, 0))]

    out = pl.pallas_call(
        _make_head_kernel(n_layers),
        grid=(Bp // tb, Sp // ts),                 # S is the reduction axis
        in_specs=in_specs,
        out_specs=pl.BlockSpec((tb, ncp), lambda b, s: (b, 0)),
        out_shape=jax.ShapeDtypeStruct((Bp, ncp), jnp.float32),
        scratch_shapes=[pltpu.VMEM((tb, H), jnp.float32),
                        pltpu.VMEM((tb, 1), jnp.float32)],
        compiler_params=pltpu.CompilerParams(
            dimension_semantics=("parallel", "arbitrary"),
            vmem_limit_bytes=_VMEM_LIMIT),
    )(*args)
    return out[:B, :num_classes]


# ---------------------------------------------------------------------------
# Deterministic mini-BERT encoder (stand-in for AutoModel.from_pretrained)
# ---------------------------------------------------------------------------
def _layer_norm(x, gamma, beta, eps=1e-12):
    mean = jnp.mean(x, axis=-1, keepdims=True)
    var = jnp.mean((x - mean) ** 2, axis=-1, keepdims=True)
    return (x - mean) / jnp.sqrt(var + eps) * gamma + beta


def init_encoder_params(key, vocab, max_seq, hidden, n_layers, n_heads, ffn):
    def nrm(k, shape):
        return (jax.random.normal(k, shape, jnp.float32) * 0.02).astype(jnp.float32)

    keys = jax.random.split(key, 2 + 6 * n_layers)
    params = {
        "word_emb": nrm(keys[0], (vocab, hidden)),
        "pos_emb": nrm(keys[1], (max_seq, hidden)),
        "emb_ln_g": jnp.ones((hidden,), jnp.float32),
        "emb_ln_b": jnp.zeros((hidden,), jnp.float32),
        "n_heads": n_heads,
        "layers": [],
    }
    ki = 2
    bf16 = jnp.bfloat16
    for _ in range(n_layers):
        wq, wk, wv = (nrm(keys[ki + j], (hidden, hidden)) for j in range(3))
        lp = {
            # fused QKV projection weight [H, 3H], stored bf16 (MXU operand dtype)
            "wqkv": jnp.concatenate([wq, wk, wv], axis=1).astype(bf16),
            "bqkv": jnp.zeros((3 * hidden,), jnp.float32),
            "wo": nrm(keys[ki + 3], (hidden, hidden)).astype(bf16),
            "bo": jnp.zeros((hidden,), jnp.float32),
            "w1": nrm(keys[ki + 4], (hidden, ffn)).astype(bf16),
            "b1": jnp.zeros((ffn,), jnp.float32),
            "w2": nrm(keys[ki + 5], (ffn, hidden)).astype(bf16),
            "b2": jnp.zeros((hidden,), jnp.float32),
            "ln1_g": jnp.ones((hidden,), jnp.float32),
            "ln1_b": jnp.zeros((hidden,), jnp.float32),
            "ln2_g": jnp.ones((hidden,), jnp.float32),
            "ln2_b": jnp.zeros((hidden,), jnp.float32),
        }
        params["layers"].append(lp)
        ki += 6
    return params


def mini_bert_encoder(params, input_ids, attention_mask):
    B, S = input_ids.shape
    H = params["word_emb"].shape[1]
    nh = params["n_heads"]
    hd = H // nh
    scale = 1.0 / math.sqrt(hd)

    # embedding lookup + embedding LayerNorm (gather: plain JAX)
    x = params["word_emb"][input_ids] + params["pos_emb"][jnp.arange(S)][None]
    x = _layer_norm(x, params["emb_ln_g"], params["emb_ln_b"])
    mask_bias = ((1.0 - attention_mask.astype(jnp.float32)) * -1e9).reshape(B, 1, S)

    x2 = x.reshape(B * S, H)                      # f32 residual stream
    for lp in params["layers"]:
        # fused QKV projection, bf16 activation stream + bf16 writeback
        qkv = pallas_linear(x2.astype(jnp.bfloat16), lp["wqkv"], lp["bqkv"],
                            out_dtype=jnp.bfloat16, tn=768)      # [B*S, 3H] bf16
        # transpose-free fused attention on the [B, S, 3H] slab
        ctx = pallas_attention(qkv.reshape(B, S, 3 * H), mask_bias,
                               nh, hd, scale)                    # [B, S, H] bf16
        # output projection + residual + LayerNorm, fused (f32 residual stream)
        x2 = pallas_linear_res_ln(ctx.reshape(B * S, H), lp["wo"], lp["bo"],
                                  x2, lp["ln1_g"], lp["ln1_b"])
        # FFN: Linear+bias+GELU fused (bf16 intermediate), then fused out-proj
        h = pallas_linear(x2.astype(jnp.bfloat16), lp["w1"], lp["b1"],
                          activation="gelu", out_dtype=jnp.bfloat16)
        x2 = pallas_linear_res_ln(h, lp["w2"], lp["b2"], x2,
                                  lp["ln2_g"], lp["ln2_b"])
    return x2.reshape(B, S, H)                    # last_hidden_state


def init_classifier_params(key, layer_sizes):
    n = len(layer_sizes) - 1
    keys = jax.random.split(key, n)
    weights, biases = [], []
    for i in range(n):
        w = (jax.random.normal(keys[i], (layer_sizes[i], layer_sizes[i + 1]),
                               jnp.float32) * 0.02).astype(jnp.float32)
        weights.append(w)
        biases.append(jnp.zeros((layer_sizes[i + 1],), jnp.float32))
    return weights, biases


# ---------------------------------------------------------------------------
if __name__ == "__main__":
    B, S = 2, 8
    VOCAB, HIDDEN, N_LAYERS, N_HEADS, FFN = 100, 32, 2, 4, 64
    NUM_CLASSES = 3
    classifier_config = {
        "hidden_dim": [64],
        "dropout_rate": 0.1,
        "activation": "gelu",
        "bert_hidden_size": HIDDEN,
    }

    key = jax.random.PRNGKey(0)
    k_enc, k_cls, k_ids = jax.random.split(key, 3)

    enc_params = init_encoder_params(k_enc, VOCAB, S, HIDDEN, N_LAYERS, N_HEADS, FFN)
    layer_sizes = [HIDDEN] + classifier_config["hidden_dim"] + [NUM_CLASSES]
    cls_w, cls_b = init_classifier_params(k_cls, layer_sizes)

    input_ids = jax.random.randint(k_ids, (B, S), 0, VOCAB, dtype=jnp.int32)
    attention_mask = jnp.array(
        [[1, 1, 1, 1, 1, 1, 0, 0],
         [1, 1, 1, 1, 1, 1, 1, 1]], dtype=jnp.float32)

    # BERT encoder -> last_hidden_state (Pallas tiled/fused kernels inside)
    token_emb = mini_bert_encoder(enc_params, input_ids, attention_mask)
    # fused Pallas head: S-tiled masked mean-pool + L2 normalize + MLP
    logits = classifier_head(token_emb, attention_mask, cls_w, cls_b, NUM_CLASSES)
    logits = jax.block_until_ready(logits)

    assert logits.shape == (B, NUM_CLASSES)
    assert bool(jnp.all(jnp.isfinite(logits)))
    print("KERNEL_OK")
</pallas_src>

<mosaic_0001>
module attributes {stable_mosaic.version = 11 : i64} {
  func.func @kernel(%arg0: i32, %arg1: i32, %arg2: i32, %arg3: memref<16x32xbf16, #tpu.memory_space<vmem>>, %arg4: memref<32x96xbf16, #tpu.memory_space<vmem>>, %arg5: memref<1x96xf32, #tpu.memory_space<vmem>>, %arg6: memref<16x96xbf16, #tpu.memory_space<vmem>>, %arg7: memref<16x96xf32, #tpu.memory_space<vmem>>) attributes {dimension_semantics = [#tpu.dimension_semantics<parallel>, #tpu.dimension_semantics<parallel>, #tpu.dimension_semantics<arbitrary>], iteration_bounds = array<i64: 1, 1, 1>, scalar_prefetch = 0 : i64, scratch_operands = 1 : i64, tpu.core_type = #tpu.core_type<tc>, window_params = [{transform_indices = @transform_0, window_bounds = array<i64: 16, 32>}, {transform_indices = @transform_1, window_bounds = array<i64: 32, 96>}, {transform_indices = @transform_2, window_bounds = array<i64: 1, 96>}, {transform_indices = @transform_3, window_bounds = array<i64: 16, 96>}]} {
    %c0_i32 = arith.constant 0 : i32
    %0 = arith.cmpi eq, %arg2, %c0_i32 : i32
    %1 = arith.extui %0 : i1 to i32
    %c0_i32_0 = arith.constant 0 : i32
    %2 = arith.cmpi ne, %1, %c0_i32_0 : i32
    scf.if %2 {
      %cst_10 = arith.constant 0.000000e+00 : f32
      %12 = vector.broadcast %cst_10 : f32 to vector<16x96xf32>
      %c0_11 = arith.constant 0 : index
      %c0_12 = arith.constant 0 : index
      %13 = vector.load %arg7[%c0_11, %c0_12] : memref<16x96xf32, #tpu.memory_space<vmem>>, vector<16x96xf32>
      tpu.vector_store %arg7[%c0_11, %c0_12], %12 {strides = array<i32>} : memref<16x96xf32, #tpu.memory_space<vmem>>, vector<16x96xf32>,
    } else {
    }
    %c0 = arith.constant 0 : index
    %c0_1 = arith.constant 0 : index
    %3 = vector.load %arg7[%c0, %c0_1] : memref<16x96xf32, #tpu.memory_space<vmem>>, vector<16x96xf32>
    %c0_2 = arith.constant 0 : index
    %c0_3 = arith.constant 0 : index
    %4 = vector.load %arg3[%c0_2, %c0_3] : memref<16x32xbf16, #tpu.memory_space<vmem>>, vector<16x32xbf16>
    %c0_4 = arith.constant 0 : index
    %c0_5 = arith.constant 0 : index
    %5 = vector.load %arg4[%c0_4, %c0_5] : memref<32x96xbf16, #tpu.memory_space<vmem>>, vector<32x96xbf16>
    %cst = arith.constant dense<0.000000e+00> : vector<16x96xf32>
    %6 = tpu.matmul %4, %5, %cst {dimension_numbers = #tpu.dot_dimension_numbers<[1], [0], [0], [1], [0, 0, 1, 1], [], []>} : vector<16x32xbf16>, vector<32x96xbf16>, vector<16x96xf32> -> vector<16x96xf32>
    %7 = arith.addf %3, %6 : vector<16x96xf32>
    %c0_6 = arith.constant 0 : index
    %c0_7 = arith.constant 0 : index
    %8 = vector.load %arg7[%c0_6, %c0_7] : memref<16x96xf32, #tpu.memory_space<vmem>>, vector<16x96xf32>
    tpu.vector_store %arg7[%c0_6, %c0_7], %7 {strides = array<i32>} : memref<16x96xf32, #tpu.memory_space<vmem>>, vector<16x96xf32>,
    %c0_i32_8 = arith.constant 0 : i32
    %9 = arith.cmpi eq, %arg2, %c0_i32_8 : i32
    %10 = arith.extui %9 : i1 to i32
    %c0_i32_9 = arith.constant 0 : i32
    %11 = arith.cmpi ne, %10, %c0_i32_9 : i32
    scf.if %11 {
      %c0_10 = arith.constant 0 : index
      %c0_11 = arith.constant 0 : index
      %12 = vector.load %arg7[%c0_10, %c0_11] : memref<16x96xf32, #tpu.memory_space<vmem>>, vector<16x96xf32>
      %c0_12 = arith.constant 0 : index
      %c0_13 = arith.constant 0 : index
      %13 = vector.load %arg5[%c0_12, %c0_13] : memref<1x96xf32, #tpu.memory_space<vmem>>, vector<1x96xf32>
      %14 = vector.broadcast %13 : vector<1x96xf32> to vector<16x96xf32>
      %15 = arith.addf %12, %14 : vector<16x96xf32>
      %16 = arith.truncf %15 : vector<16x96xf32> to vector<16x96xbf16>
      %c0_14 = arith.constant 0 : index
      %c0_15 = arith.constant 0 : index
      %17 = vector.load %arg6[%c0_14, %c0_15] : memref<16x96xbf16, #tpu.memory_space<vmem>>, vector<16x96xbf16>
      tpu.vector_store %arg6[%c0_14, %c0_15], %16 {strides = array<i32>} : memref<16x96xbf16, #tpu.memory_space<vmem>>, vector<16x96xbf16>,
    } else {
    }
    return
  }
  func.func @transform_0(%arg0: i32, %arg1: i32, %arg2: i32) -> (i32, i32) {
    %c0_i32 = arith.constant 0 : i32
    return %arg0, %arg2 : i32, i32
  }
  func.func @transform_1(%arg0: i32, %arg1: i32, %arg2: i32) -> (i32, i32) {
    %c0_i32 = arith.constant 0 : i32
    return %arg2, %arg1 : i32, i32
  }
  func.func @transform_2(%arg0: i32, %arg1: i32, %arg2: i32) -> (i32, i32) {
    %c0_i32 = arith.constant 0 : i32
    %c0_i32_0 = arith.constant 0 : i32
    return %c0_i32, %arg1 : i32, i32
  }
  func.func @transform_3(%arg0: i32, %arg1: i32, %arg2: i32) -> (i32, i32) {
    %c0_i32 = arith.constant 0 : i32
    return %arg0, %arg1 : i32, i32
  }
}

</mosaic_0001>

<bundles_post_ra>
// kernel: tpu_custom_call.1
= control target key start
LH: loop header
LB: loop body
LE: loop exit
PB: predicated region body
PF: predicated region fallthrough
CT: control target
= control target key end

     0   :  { %8 = vsyncpa [#allocation4], 0  ;;  %s317_s0 = inlined_call_operand.hbm [shape: bf16[16,32], index: 0, kind: input, shape index: {}]   ;;  %s318_s1 = inlined_call_operand.hbm [shape: bf16[32,96], index: 1, kind: input, shape index: {}]   ;;  %s319_s2 = inlined_call_operand.vmem [shape: f32[1,96], index: 2, kind: input, shape index: {}]   ;;  %s320_s3 = inlined_call_operand.hbm [shape: bf16[16,96], index: 3, kind: output, shape index: {}]  }
   0x1   :  { %9 = vsyncpa [#allocation7], 0 }
   0x2   :  { %10 = vsyncpa [#allocation5], 0  ;;  %s265_s12 = smov [#allocation3]  }
   0x3   :  { %s16_s13 = sshll.u32 %s265_s12, 4  ;;  %s17_s13 = int_to_ptr.vmem [resolvable:$true] %s16_s13 }
   0x4   :  { %s207_s14 = scalar_lea.vmem %s17_s13, 128  ;;  %p212_p1 = scmp.lt.s32.totalorder %s17_s13, %s17_s13 }
   0x5   :  { %p208_p0 = scmp.ne.s32.totalorder %s17_s13, %s207_s14  ;;  %p213_p2 = scmp.lt.s32.totalorder %s207_s14, %s207_s14 }
   0x7   :  { %p214_p3 = por %p213_p2, %p212_p1 }
   0x9   :  { %p215_p4 = pnand %p214_p3, %p208_p0 }
   0xb   :  { %218 = shalt.err (!%p215_p4)
}
   0xc   :  { %s266_s15 = smov 64   ;;  %s267_s16 = smov 4  }
   0xd   :  { %22 = dma.hbm_to_vmem [thread:$0]  %s317_s0, 128, %s17_s13, [#allocation4], %s266_s15, %s266_s15, %s267_s16  }
   0xe   :  { %s268_s19 = smov [#allocation6]  }
   0xf   :  { %s28_s20 = sshll.u32 %s268_s19, 4  ;;  %s29_s20 = int_to_ptr.vmem [resolvable:$true] %s28_s20 }
  0x10   :  { %s227_s21 = scalar_lea.vmem %s29_s20, 256  ;;  %p232_p6 = scmp.lt.s32.totalorder %s29_s20, %s29_s20 }
  0x11   :  { %p228_p5 = scmp.ne.s32.totalorder %s29_s20, %s227_s21  ;;  %p233_p7 = scmp.lt.s32.totalorder %s227_s21, %s227_s21 }
  0x13   :  { %p234_p8 = por %p233_p7, %p232_p6 }
  0x15   :  { %p235_p9 = pnand %p234_p8, %p228_p5 }
  0x17   :  { %238 = shalt.err (!%p235_p9)
}
  0x18   :  { %34 = dma.hbm_to_vmem [thread:$0]  %s318_s1, 256, %s29_s20, [#allocation7], %s266_s15, %s266_s15, %s267_s16  }
  0x19   :  { %259 = dma.done.wait [#allocation4], 128  }
  0x1a   :  { %260 = vsyncadd [#allocation4], 4294967168 }
  0x1b   :  { %261 = dma.done.wait [#allocation7], 256  }
  0x1c   :  { %262 = vsyncadd [#allocation7], 4294967040  ;;  %vm48_vm0 = vcmask 785408   ;;  %v269_v0 = vmov 0.0   ;;  %vm270_vm1 = vmmov 0   ;;  %v196_v1 = vld [vmem:[#allocation6 + $0x8] sm:$0xff]  }
  0x1d   :  { %49 = vst.msk [vmem:[#allocation2] sm:$0xff] %vm48_vm0, %v269_v0  ;;  %50 = vst.msk [vmem:[#allocation2 + $0x8] sm:$0xff] %vm48_vm0, %v269_v0  ;;  %181 = vmatprep.subr.bf16.mxu0 %v269_v0  ;;  %185 = vmatprep.mubr.msk.bf16.mxu0 %vm270_vm1, %v269_v0  ;;  %v197_v2 = vld [vmem:[#allocation6] sm:$0xff]   ;;  %v198_v3 = vld [vmem:[#allocation3] sm:$0xff]   ;;  %vm76_vm2 = vcmask 261120   ;;  %vm148_vm3 = vcmask 781312  }
  0x1e   :  { %182 = vmatpush3.bf16.msra.mxu0 %v196_v1  ;;  %v173_v12 = vld [vmem:[%s319_s2] ss:$0 sm:$0xff]  ;;  %s271_s24 = smov [#allocation8]  }
  0x1f   :  { %183 = vmatprep.subr.bf16.mxu0 %v269_v0  ;;  %s156_s25 = sshll.u32 %s271_s24, 4  ;;  %s157_s25 = int_to_ptr.vmem [resolvable:$true] %s156_s25 }
  0x20   :  { %s239_s26 = scalar_lea.vmem %s157_s25, 128  ;;  %p244_p11 = scmp.lt.s32.totalorder %s157_s25, %s157_s25 }
  0x21   :  { %p240_p10 = scmp.ne.s32.totalorder %s157_s25, %s239_s26  ;;  %p245_p12 = scmp.lt.s32.totalorder %s239_s26, %s239_s26 }
  0x22   :  { %184 = vmatpush3.bf16.msra.mxu0 %v197_v2 }
  0x23   :  { %p246_p13 = por %p245_p12, %p244_p11 }
  0x24   :  { %v51_v4 = vld [vmem:[#allocation2] sm:$0xff]  ;;  %v52_v8 = vld [vmem:[#allocation2 + $0x8] sm:$0xff] }
  0x25   :  { %186 = vmatmul.mubr.msk.bf16.vlgmr.msra.gmra.mxu0 %vm76_vm2, %v198_v3  ;;  %p247_p0 = pnand %p246_p13, %p240_p10 }
  0xe5   :  { %v114_v5 = vpop.f32.mrf.mxu0 }
  0xe6   :  { %v121_v6 = vadd.f32 %v114_v5, %v51_v4 }
  0xe7   :  { %v187_v7 = vpop.f32.mrf.mxu0 }
  0xe8   :  { %124 = vst.msk [vmem:[#allocation2] sm:$0xff] %vm48_vm0, %v121_v6 }
  0xe9   :  { %v117_v9 = vpop.f32.mrf.mxu0 }
  0xea   :  { %v122_v10 = vadd.f32 %v117_v9, %v52_v8 }
  0xeb   :  { %v188_v11 = vpop.f32.mrf.mxu0 }
  0xec   :  { %125 = vst.msk [vmem:[#allocation2 + $0x8] sm:$0xff] %vm48_vm0, %v122_v10 }
  0xef   :  { %v129_v13 = vld [vmem:[#allocation2] sm:$0xff] }
  0xf0   :  { %v138_v14 = vadd.f32 %v173_v12, %v129_v13 }
  0xf2   :  { %v176_v15 = vpack.c.bf16 %v138_v14, %v138_v14 }
  0xf3   :  { %v130_v16 = vld [vmem:[#allocation2 + $0x8] sm:$0xff] }
  0xf4   :  { %v139_v17 = vadd.f32 %v173_v12, %v130_v16  ;;  %149 = vst.msk [vmem:[#allocation8] sm:$0xf] %vm148_vm3, %v176_v15 }
  0xf6   :  { %v177_v18 = vpack.c.bf16 %v139_v17, %v139_v17 }
  0xf8   :  { %150 = vst.msk [vmem:[#allocation8 + $0x4] sm:$0xf] %vm148_vm3, %v177_v18 }
  0xf9   :  { %250 = shalt.err (!%p247_p0)
}
  0xfa   :  { %162 = dma.vmem_to_hbm [thread:$0]  %s157_s25, 128, %s320_s3, [#allocation5], %s266_s15, %s266_s15, %s267_s16  }
  0xfb   :  { %263 = dma.done.wait [#allocation5], 128  }
  0xfc   :  { %264 = vsyncadd [#allocation5], 4294967168 }
  0xfd   :  { %166 = vsyncpa [#allocation4], 1 }
  0xfe   :  { %167 = vsyncpa [#allocation7], 1 }
  0xff   :  { %168 = vsyncpa [#allocation5], 1 }

</bundles_post_ra>
